<compile_context>
chip_gen: v7x
topology: tpu7x:2x2x1
jax: 0.10.0
libtpu: 0.0.40
codegen_flags: <defaults>
</compile_context>

<pallas_src>
import numpy as np
import jax
import jax.numpy as jnp
from jax.experimental import pallas as pl
from jax.experimental.pallas import tpu as pltpu


def _round_up(x, m):
    return ((x + m - 1) // m) * m


# ---------------------------------------------------------------------------
# Pallas kernel: one grid step = one (edge, pixel-chunk).
#   out[e, 0, :] += sum_rows  || R'_e @ pred + T_e - pts3d[idx[e]] ||_2 * log(conf)
# ---------------------------------------------------------------------------
def _edge_term_kernel(idx_ref, pose_ref, pred_ref, tgt_ref, conf_ref, out_ref):
    # idx_ref : (E,) int32   scalar-prefetch, only used by the target index_map
    # pose_ref: (12*E,) f32  SMEM, per-edge [R*diag(adapt) | T] (already pw-scaled), row-major
    # pred_ref: (3, CR, 128) VMEM channel planes of the raw predictions
    # tgt_ref : (3, CR, 128) VMEM channel planes of proj_pts3d[idx[e]]
    # conf_ref: (CR, 128)    VMEM confidences (padding == 1.0 -> log weight 0)
    # out_ref : (1, 128)     VMEM per-lane accumulator, resident across the chunk axis
    del idx_ref
    e = pl.program_id(0)
    base = e * 12

    r00 = pose_ref[base + 0]; r01 = pose_ref[base + 1]; r02 = pose_ref[base + 2]
    r10 = pose_ref[base + 3]; r11 = pose_ref[base + 4]; r12 = pose_ref[base + 5]
    r20 = pose_ref[base + 6]; r21 = pose_ref[base + 7]; r22 = pose_ref[base + 8]
    tx  = pose_ref[base + 9]; ty  = pose_ref[base + 10]; tz = pose_ref[base + 11]

    px = pred_ref[0]                      # (CR, 128) dense channel planes
    py = pred_ref[1]
    pz = pred_ref[2]

    qx = r00 * px + r01 * py + r02 * pz + tx
    qy = r10 * px + r11 * py + r12 * pz + ty
    qz = r20 * px + r21 * py + r22 * pz + tz

    dx = qx - tgt_ref[0]
    dy = qy - tgt_ref[1]
    dz = qz - tgt_ref[2]

    dist = jnp.sqrt(dx * dx + dy * dy + dz * dz)   # ALL_DISTS['l1']: L2 norm over xyz
    w = jnp.log(conf_ref[...])                     # conf_trf = log; pad conf 1.0 -> weight 0
    partial = jnp.sum(dist * w, axis=0, keepdims=True)   # (1, 128) per-lane partial sums

    @pl.when(pl.program_id(1) == 0)
    def _():
        out_ref[...] = jnp.zeros_like(out_ref)

    out_ref[...] += partial


def _edge_side_sums(img_idx, pose_flat, pred_cm, tgt_all, conf_cm, chunk_rows):
    """Per-(edge,side) weighted-distance pixel sums. Returns (E,) float32."""
    E, _, rows_pad, _ = pred_cm.shape
    num_chunks = rows_pad // chunk_rows
    out = pl.pallas_call(
        _edge_term_kernel,
        out_shape=jax.ShapeDtypeStruct((E, 1, 128), jnp.float32),
        grid_spec=pltpu.PrefetchScalarGridSpec(
            num_scalar_prefetch=1,
            grid=(E, num_chunks),
            in_specs=[
                pl.BlockSpec(memory_space=pltpu.MemorySpace.SMEM),        # pose (12*E,)
                pl.BlockSpec((None, 3, chunk_rows, 128),
                             lambda e, c, idx: (e, 0, c, 0)),             # pred
                pl.BlockSpec((None, 3, chunk_rows, 128),
                             lambda e, c, idx: (idx[e], 0, c, 0)),        # target, gathered via prefetch
                pl.BlockSpec((None, chunk_rows, 128),
                             lambda e, c, idx: (e, c, 0)),                # conf
            ],
            out_specs=pl.BlockSpec((None, 1, 128),
                                   lambda e, c, idx: (e, 0, 0)),          # resident accumulator
        ),
        compiler_params=pltpu.CompilerParams(
            dimension_semantics=("parallel", "arbitrary")),
    )(img_idx, pose_flat, pred_cm, tgt_all, conf_cm)
    return jnp.sum(out, axis=(1, 2))                                      # (E,)


# ---------------------------------------------------------------------------
# Plain-JAX glue reproducing the module's parameter transforms (tiny per-edge math)
# ---------------------------------------------------------------------------
def signed_expm1(x):
    s = jnp.sign(x)
    return s * jnp.expm1(s * x)


def unitquat_to_rotmat(q):
    # roma XYZW convention
    x, y, z, w = q[..., 0], q[..., 1], q[..., 2], q[..., 3]
    return jnp.stack([
        jnp.stack([1 - 2 * (y * y + z * z), 2 * (x * y - z * w), 2 * (x * z + y * w)], -1),
        jnp.stack([2 * (x * y + z * w), 1 - 2 * (x * x + z * z), 2 * (y * z - x * w)], -1),
        jnp.stack([2 * (x * z - y * w), 2 * (y * z + x * w), 1 - 2 * (x * x + y * y)], -1),
    ], -2)


def get_pw_poses(pw_poses, base_scale):
    Q = pw_poses[:, :4]
    Qn = Q / jnp.linalg.norm(Q, axis=-1, keepdims=True)
    R = unitquat_to_rotmat(Qn)                                  # (E, 3, 3)
    Tt = signed_expm1(pw_poses[:, 4:7])                         # (E, 3)
    log_s = pw_poses[:, -1]
    # norm_pw_scale=True: scale * exp(log(base_scale) - mean(log_scale))
    scale = jnp.exp(log_s) * jnp.exp(jnp.log(base_scale) - jnp.mean(log_s))
    return R * scale[:, None, None], Tt * scale[:, None]


def get_adaptors(pw_adaptors, pw_break):
    adapt = jnp.concatenate([pw_adaptors[:, 0:1], pw_adaptors], axis=-1)  # (E, 3)
    adapt = adapt - adapt.mean(axis=1, keepdims=True)
    return jnp.exp(adapt / pw_break)


def base_pc_optimizer_forward(pw_poses, pw_adaptors, edges, pred_i, pred_j,
                              conf_i, conf_j, proj_pts3d,
                              base_scale=0.5, pw_break=20.0, max_chunk_rows=256):
    E, H, W, _ = pred_i.shape
    HW = H * W
    rows = pl.cdiv(HW, 128)
    chunk_rows = min(max_chunk_rows, _round_up(rows, 8))   # multiple of 8 (sublane constraint)
    rows_pad = _round_up(rows, chunk_rows)
    Npad = rows_pad * 128

    R, Tt = get_pw_poses(pw_poses, base_scale)              # (E,3,3), (E,3)
    adapt = get_adaptors(pw_adaptors, pw_break)             # (E,3)
    # Fold adaptor into the rotation: R' = R @ diag(adapt)  (scale columns)
    R_eff = R * adapt[:, None, :]
    pose_flat = jnp.concatenate([R_eff.reshape(E, 9), Tt], axis=-1).reshape(-1)  # (12E,)

    idx_i = jnp.array([i for i, _ in edges], dtype=jnp.int32)
    idx_j = jnp.array([j for _, j in edges], dtype=jnp.int32)

    # TODO(synk): upstream producers (pred1/pred2 nets, get_pts3d) should emit channel-major
    # (N, 3, rows, 128) directly; these relayouts cost one extra HBM pass per array here.
    def pts_cm(pts):   # (N,H,W,3) -> (N,3,rows_pad,128) channel-major, zero-padded
        N = pts.shape[0]
        x = pts.reshape(N, HW, 3).transpose(0, 2, 1)
        x = jnp.pad(x, ((0, 0), (0, 0), (0, Npad - HW)))
        return x.reshape(N, 3, rows_pad, 128)

    def conf_cm(c):    # (N,H,W) -> (N,rows_pad,128), padded with 1.0 (log -> 0 weight)
        N = c.shape[0]
        x = c.reshape(N, HW)
        x = jnp.pad(x, ((0, 0), (0, Npad - HW)), constant_values=1.0)
        return x.reshape(N, rows_pad, 128)

    tgt_all = pts_cm(proj_pts3d)   # (n_imgs,3,rows_pad,128) stored once; gathered inside kernel

    sums_i = _edge_side_sums(idx_i, pose_flat, pts_cm(pred_i), tgt_all,
                             conf_cm(conf_i), chunk_rows)                 # (E,)
    sums_j = _edge_side_sums(idx_j, pose_flat, pts_cm(pred_j), tgt_all,
                             conf_cm(conf_j), chunk_rows)                 # (E,)

    loss = (jnp.sum(sums_i) + jnp.sum(sums_j)) / float(HW) / E
    return loss


def reference_forward(pw_poses, pw_adaptors, edges, pred_i, pred_j,
                      conf_i, conf_j, proj_pts3d, base_scale=0.5, pw_break=20.0):
    E = len(edges)
    R, Tt = get_pw_poses(pw_poses, base_scale)
    adapt = get_adaptors(pw_adaptors, pw_break)
    loss = jnp.float32(0.0)
    for e, (i, j) in enumerate(edges):
        al_i = jnp.einsum('hwk,ck->hwc', pred_i[e] * adapt[e], R[e]) + Tt[e]
        al_j = jnp.einsum('hwk,ck->hwc', pred_j[e] * adapt[e], R[e]) + Tt[e]
        li = jnp.mean(jnp.linalg.norm(proj_pts3d[i] - al_i, axis=-1) * jnp.log(conf_i[e]))
        lj = jnp.mean(jnp.linalg.norm(proj_pts3d[j] - al_j, axis=-1) * jnp.log(conf_j[e]))
        loss = loss + li + lj
    return loss / E


if __name__ == "__main__":
    key = jax.random.PRNGKey(0)
    n_imgs, H, W = 3, 16, 16
    edges = [(0, 1), (1, 2), (2, 0)]
    E = len(edges)
    ks = jax.random.split(key, 6)

    # parameters (shapes from __init__: pw_poses (n_edges, 1+POSE_DIM=8), pw_adaptors (n_edges, 2))
    pw_poses = jax.random.normal(ks[0], (E, 8), jnp.float32)       # rand_pose = torch.randn
    pw_adaptors = jnp.zeros((E, 2), jnp.float32)                   # torch.zeros

    # per-edge predictions / confidences (pred1['pts3d'], pred2['pts3d_in_other_view'], confs >= 1)
    pred_i = jax.random.normal(ks[1], (E, H, W, 3), jnp.float32)
    pred_j = jax.random.normal(ks[2], (E, H, W, 3), jnp.float32)
    conf_i = 1.0 + jnp.exp(jax.random.normal(ks[3], (E, H, W), jnp.float32))
    conf_j = 1.0 + jnp.exp(jax.random.normal(ks[4], (E, H, W), jnp.float32))

    # TODO(synk): depth_to_pts3d()/get_pts3d() is abstract (NotImplementedError) in
    # BasePCOptimizer; the global per-image points are synthesized here.
    proj_pts3d = jax.random.normal(ks[5], (n_imgs, H, W, 3), jnp.float32)

    loss = base_pc_optimizer_forward(pw_poses, pw_adaptors, edges, pred_i, pred_j,
                                     conf_i, conf_j, proj_pts3d)
    loss = jax.block_until_ready(loss)

    ref = reference_forward(pw_poses, pw_adaptors, edges, pred_i, pred_j,
                            conf_i, conf_j, proj_pts3d)
    assert np.allclose(np.asarray(loss), np.asarray(ref), rtol=1e-4, atol=1e-5), (loss, ref)
    print("KERNEL_OK")
</pallas_src>

<mosaic_0001>
module attributes {stable_mosaic.version = 11 : i64} {
  func.func @_edge_term_kernel(%arg0: i32, %arg1: i32, %arg2: memref<3xi32, #tpu.memory_space<smem>>, %arg3: memref<36xf32, #tpu.memory_space<smem>>, %arg4: memref<1x3x8x128xf32, #tpu.memory_space<vmem>>, %arg5: memref<1x3x8x128xf32, #tpu.memory_space<vmem>>, %arg6: memref<1x8x128xf32, #tpu.memory_space<vmem>>, %arg7: memref<1x1x128xf32, #tpu.memory_space<vmem>>) attributes {dimension_semantics = [#tpu.dimension_semantics<parallel>, #tpu.dimension_semantics<arbitrary>], iteration_bounds = array<i64: 3, 1>, scalar_prefetch = 1 : i64, scratch_operands = 0 : i64, tpu.core_type = #tpu.core_type<tc>, window_params = [{transform_indices = @transform_0, window_bounds = array<i64: 36>}, {transform_indices = @transform_1, window_bounds = array<i64: 1, 3, 8, 128>}, {transform_indices = @transform_2, window_bounds = array<i64: 1, 3, 8, 128>}, {transform_indices = @transform_3, window_bounds = array<i64: 1, 8, 128>}, {transform_indices = @transform_4, window_bounds = array<i64: 1, 1, 128>}]} {
    %c12_i32 = arith.constant 12 : i32
    %0 = arith.muli %arg0, %c12_i32 : i32
    %c0_i32 = arith.constant 0 : i32
    %1 = arith.addi %0, %c0_i32 : i32
    %2 = arith.index_cast %1 : i32 to index
    %3 = memref.load %arg3[%2] : memref<36xf32, #tpu.memory_space<smem>>
    %c1_i32 = arith.constant 1 : i32
    %4 = arith.addi %0, %c1_i32 : i32
    %5 = arith.index_cast %4 : i32 to index
    %6 = memref.load %arg3[%5] : memref<36xf32, #tpu.memory_space<smem>>
    %c2_i32 = arith.constant 2 : i32
    %7 = arith.addi %0, %c2_i32 : i32
    %8 = arith.index_cast %7 : i32 to index
    %9 = memref.load %arg3[%8] : memref<36xf32, #tpu.memory_space<smem>>
    %c3_i32 = arith.constant 3 : i32
    %10 = arith.addi %0, %c3_i32 : i32
    %11 = arith.index_cast %10 : i32 to index
    %12 = memref.load %arg3[%11] : memref<36xf32, #tpu.memory_space<smem>>
    %c4_i32 = arith.constant 4 : i32
    %13 = arith.addi %0, %c4_i32 : i32
    %14 = arith.index_cast %13 : i32 to index
    %15 = memref.load %arg3[%14] : memref<36xf32, #tpu.memory_space<smem>>
    %c5_i32 = arith.constant 5 : i32
    %16 = arith.addi %0, %c5_i32 : i32
    %17 = arith.index_cast %16 : i32 to index
    %18 = memref.load %arg3[%17] : memref<36xf32, #tpu.memory_space<smem>>
    %c6_i32 = arith.constant 6 : i32
    %19 = arith.addi %0, %c6_i32 : i32
    %20 = arith.index_cast %19 : i32 to index
    %21 = memref.load %arg3[%20] : memref<36xf32, #tpu.memory_space<smem>>
    %c7_i32 = arith.constant 7 : i32
    %22 = arith.addi %0, %c7_i32 : i32
    %23 = arith.index_cast %22 : i32 to index
    %24 = memref.load %arg3[%23] : memref<36xf32, #tpu.memory_space<smem>>
    %c8_i32 = arith.constant 8 : i32
    %25 = arith.addi %0, %c8_i32 : i32
    %26 = arith.index_cast %25 : i32 to index
    %27 = memref.load %arg3[%26] : memref<36xf32, #tpu.memory_space<smem>>
    %c9_i32 = arith.constant 9 : i32
    %28 = arith.addi %0, %c9_i32 : i32
    %29 = arith.index_cast %28 : i32 to index
    %30 = memref.load %arg3[%29] : memref<36xf32, #tpu.memory_space<smem>>
    %c10_i32 = arith.constant 10 : i32
    %31 = arith.addi %0, %c10_i32 : i32
    %32 = arith.index_cast %31 : i32 to index
    %33 = memref.load %arg3[%32] : memref<36xf32, #tpu.memory_space<smem>>
    %c11_i32 = arith.constant 11 : i32
    %34 = arith.addi %0, %c11_i32 : i32
    %35 = arith.index_cast %34 : i32 to index
    %36 = memref.load %arg3[%35] : memref<36xf32, #tpu.memory_space<smem>>
    %c0 = arith.constant 0 : index
    %c0_0 = arith.constant 0 : index
    %c0_1 = arith.constant 0 : index
    %c0_2 = arith.constant 0 : index
    %37 = vector.load %arg4[%c0, %c0_0, %c0_1, %c0_2] : memref<1x3x8x128xf32, #tpu.memory_space<vmem>>, vector<1x1x8x128xf32>
    %38 = vector.shape_cast %37 : vector<1x1x8x128xf32> to vector<8x128xf32>
    %c0_3 = arith.constant 0 : index
    %c1 = arith.constant 1 : index
    %c0_4 = arith.constant 0 : index
    %c0_5 = arith.constant 0 : index
    %39 = vector.load %arg4[%c0_3, %c1, %c0_4, %c0_5] : memref<1x3x8x128xf32, #tpu.memory_space<vmem>>, vector<1x1x8x128xf32>
    %40 = vector.shape_cast %39 : vector<1x1x8x128xf32> to vector<8x128xf32>
    %c0_6 = arith.constant 0 : index
    %c2 = arith.constant 2 : index
    %c0_7 = arith.constant 0 : index
    %c0_8 = arith.constant 0 : index
    %41 = vector.load %arg4[%c0_6, %c2, %c0_7, %c0_8] : memref<1x3x8x128xf32, #tpu.memory_space<vmem>>, vector<1x1x8x128xf32>
    %42 = vector.shape_cast %41 : vector<1x1x8x128xf32> to vector<8x128xf32>
    %43 = vector.broadcast %3 : f32 to vector<8x128xf32>
    %44 = arith.mulf %43, %38 : vector<8x128xf32>
    %45 = vector.broadcast %6 : f32 to vector<8x128xf32>
    %46 = arith.mulf %45, %40 : vector<8x128xf32>
    %47 = arith.addf %44, %46 : vector<8x128xf32>
    %48 = vector.broadcast %9 : f32 to vector<8x128xf32>
    %49 = arith.mulf %48, %42 : vector<8x128xf32>
    %50 = arith.addf %47, %49 : vector<8x128xf32>
    %51 = vector.broadcast %30 : f32 to vector<8x128xf32>
    %52 = arith.addf %50, %51 : vector<8x128xf32>
    %53 = vector.broadcast %12 : f32 to vector<8x128xf32>
    %54 = arith.mulf %53, %38 : vector<8x128xf32>
    %55 = vector.broadcast %15 : f32 to vector<8x128xf32>
    %56 = arith.mulf %55, %40 : vector<8x128xf32>
    %57 = arith.addf %54, %56 : vector<8x128xf32>
    %58 = vector.broadcast %18 : f32 to vector<8x128xf32>
    %59 = arith.mulf %58, %42 : vector<8x128xf32>
    %60 = arith.addf %57, %59 : vector<8x128xf32>
    %61 = vector.broadcast %33 : f32 to vector<8x128xf32>
    %62 = arith.addf %60, %61 : vector<8x128xf32>
    %63 = vector.broadcast %21 : f32 to vector<8x128xf32>
    %64 = arith.mulf %63, %38 : vector<8x128xf32>
    %65 = vector.broadcast %24 : f32 to vector<8x128xf32>
    %66 = arith.mulf %65, %40 : vector<8x128xf32>
    %67 = arith.addf %64, %66 : vector<8x128xf32>
    %68 = vector.broadcast %27 : f32 to vector<8x128xf32>
    %69 = arith.mulf %68, %42 : vector<8x128xf32>
    %70 = arith.addf %67, %69 : vector<8x128xf32>
    %71 = vector.broadcast %36 : f32 to vector<8x128xf32>
    %72 = arith.addf %70, %71 : vector<8x128xf32>
    %c0_9 = arith.constant 0 : index
    %c0_10 = arith.constant 0 : index
    %c0_11 = arith.constant 0 : index
    %c0_12 = arith.constant 0 : index
    %73 = vector.load %arg5[%c0_9, %c0_10, %c0_11, %c0_12] : memref<1x3x8x128xf32, #tpu.memory_space<vmem>>, vector<1x1x8x128xf32>
    %74 = vector.shape_cast %73 : vector<1x1x8x128xf32> to vector<8x128xf32>
    %75 = arith.subf %52, %74 : vector<8x128xf32>
    %c0_13 = arith.constant 0 : index
    %c1_14 = arith.constant 1 : index
    %c0_15 = arith.constant 0 : index
    %c0_16 = arith.constant 0 : index
    %76 = vector.load %arg5[%c0_13, %c1_14, %c0_15, %c0_16] : memref<1x3x8x128xf32, #tpu.memory_space<vmem>>, vector<1x1x8x128xf32>
    %77 = vector.shape_cast %76 : vector<1x1x8x128xf32> to vector<8x128xf32>
    %78 = arith.subf %62, %77 : vector<8x128xf32>
    %c0_17 = arith.constant 0 : index
    %c2_18 = arith.constant 2 : index
    %c0_19 = arith.constant 0 : index
    %c0_20 = arith.constant 0 : index
    %79 = vector.load %arg5[%c0_17, %c2_18, %c0_19, %c0_20] : memref<1x3x8x128xf32, #tpu.memory_space<vmem>>, vector<1x1x8x128xf32>
    %80 = vector.shape_cast %79 : vector<1x1x8x128xf32> to vector<8x128xf32>
    %81 = arith.subf %72, %80 : vector<8x128xf32>
    %82 = arith.mulf %75, %75 : vector<8x128xf32>
    %83 = arith.mulf %78, %78 : vector<8x128xf32>
    %84 = arith.addf %82, %83 : vector<8x128xf32>
    %85 = arith.mulf %81, %81 : vector<8x128xf32>
    %86 = arith.addf %84, %85 : vector<8x128xf32>
    %87 = math.sqrt %86 : vector<8x128xf32>
    %c0_21 = arith.constant 0 : index
    %c0_22 = arith.constant 0 : index
    %c0_23 = arith.constant 0 : index
    %88 = vector.load %arg6[%c0_21, %c0_22, %c0_23] : memref<1x8x128xf32, #tpu.memory_space<vmem>>, vector<1x8x128xf32>
    %89 = vector.shape_cast %88 : vector<1x8x128xf32> to vector<8x128xf32>
    %90 = math.log %89 : vector<8x128xf32>
    %91 = arith.mulf %87, %90 : vector<8x128xf32>
    %cst = arith.constant dense<0.000000e+00> : vector<128xf32>
    %92 = vector.multi_reduction <add>, %91, %cst [0] : vector<8x128xf32> to vector<128xf32>
    %93 = vector.shape_cast %92 : vector<128xf32> to vector<1x128xf32>
    %c0_i32_24 = arith.constant 0 : i32
    %94 = arith.cmpi eq, %arg1, %c0_i32_24 : i32
    %95 = arith.extui %94 : i1 to i32
    %c0_i32_25 = arith.constant 0 : i32
    %96 = arith.cmpi ne, %95, %c0_i32_25 : i32
    scf.if %96 {
      %cst_32 = arith.constant 0.000000e+00 : f32
      %103 = vector.broadcast %cst_32 : f32 to vector<1x128xf32>
      %c0_33 = arith.constant 0 : index
      %c0_34 = arith.constant 0 : index
      %c0_35 = arith.constant 0 : index
      %104 = vector.load %arg7[%c0_33, %c0_34, %c0_35] : memref<1x1x128xf32, #tpu.memory_space<vmem>>, vector<1x1x128xf32>
      %105 = vector.shape_cast %104 : vector<1x1x128xf32> to vector<1x128xf32>
      %106 = vector.shape_cast %103 : vector<1x128xf32> to vector<1x1x128xf32>
      tpu.vector_store %arg7[%c0_33, %c0_34, %c0_35], %106 {strides = array<i32>} : memref<1x1x128xf32, #tpu.memory_space<vmem>>, vector<1x1x128xf32>,
    } else {
    }
    %c0_26 = arith.constant 0 : index
    %c0_27 = arith.constant 0 : index
    %c0_28 = arith.constant 0 : index
    %97 = vector.load %arg7[%c0_26, %c0_27, %c0_28] : memref<1x1x128xf32, #tpu.memory_space<vmem>>, vector<1x1x128xf32>
    %98 = vector.shape_cast %97 : vector<1x1x128xf32> to vector<1x128xf32>
    %99 = arith.addf %98, %93 : vector<1x128xf32>
    %c0_29 = arith.constant 0 : index
    %c0_30 = arith.constant 0 : index
    %c0_31 = arith.constant 0 : index
    %100 = vector.load %arg7[%c0_29, %c0_30, %c0_31] : memref<1x1x128xf32, #tpu.memory_space<vmem>>, vector<1x1x128xf32>
    %101 = vector.shape_cast %100 : vector<1x1x128xf32> to vector<1x128xf32>
    %102 = vector.shape_cast %99 : vector<1x128xf32> to vector<1x1x128xf32>
    tpu.vector_store %arg7[%c0_29, %c0_30, %c0_31], %102 {strides = array<i32>} : memref<1x1x128xf32, #tpu.memory_space<vmem>>, vector<1x1x128xf32>,
    return
  }
  func.func @transform_0(%arg0: i32, %arg1: i32, %arg2: memref<3xi32, #tpu.memory_space<smem>>) -> i32 {
    %c0_i32 = arith.constant 0 : i32
    %c0_i32_0 = arith.constant 0 : i32
    return %c0_i32 : i32
  }
  func.func @transform_1(%arg0: i32, %arg1: i32, %arg2: memref<3xi32, #tpu.memory_space<smem>>) -> (i32, i32, i32, i32) {
    %c0_i32 = arith.constant 0 : i32
    %c0_i32_0 = arith.constant 0 : i32
    %c0_i32_1 = arith.constant 0 : i32
    return %arg0, %c0_i32, %arg1, %c0_i32_0 : i32, i32, i32, i32
  }
  func.func @transform_2(%arg0: i32, %arg1: i32, %arg2: memref<3xi32, #tpu.memory_space<smem>>) -> (i32, i32, i32, i32) {
    %0 = arith.index_cast %arg0 : i32 to index
    %1 = memref.load %arg2[%0] : memref<3xi32, #tpu.memory_space<smem>>
    %c0_i32 = arith.constant 0 : i32
    %c0_i32_0 = arith.constant 0 : i32
    %c0_i32_1 = arith.constant 0 : i32
    return %1, %c0_i32, %arg1, %c0_i32_0 : i32, i32, i32, i32
  }
  func.func @transform_3(%arg0: i32, %arg1: i32, %arg2: memref<3xi32, #tpu.memory_space<smem>>) -> (i32, i32, i32) {
    %c0_i32 = arith.constant 0 : i32
    %c0_i32_0 = arith.constant 0 : i32
    return %arg0, %arg1, %c0_i32 : i32, i32, i32
  }
  func.func @transform_4(%arg0: i32, %arg1: i32, %arg2: memref<3xi32, #tpu.memory_space<smem>>) -> (i32, i32, i32) {
    %c0_i32 = arith.constant 0 : i32
    %c0_i32_0 = arith.constant 0 : i32
    %c0_i32_1 = arith.constant 0 : i32
    return %arg0, %c0_i32, %c0_i32_0 : i32, i32, i32
  }
}

</mosaic_0001>

<bundles_post_ra>
// kernel: tpu_custom_call.1
= control target key start
LH: loop header
LB: loop body
LE: loop exit
PB: predicated region body
PF: predicated region fallthrough
CT: control target
= control target key end

     0   :  { %s1406_s0 = inlined_call_operand.hbm [shape: s32[3], index: 0, kind: input, shape index: {}]   ;;  %s1407_s1 = inlined_call_operand.vmem [shape: f32[36], index: 1, kind: input, shape index: {}]   ;;  %s1408_s2 = inlined_call_operand.hbm [shape: f32[3,3,8,128], index: 2, kind: input, shape index: {}]   ;;  %s1409_s3 = inlined_call_operand.hbm [shape: f32[3,3,8,128], index: 3, kind: input, shape index: {}]   ;;  %s1410_s4 = inlined_call_operand.hbm [shape: f32[3,8,128], index: 4, kind: input, shape index: {}]   ;;  %s1411_s5 = inlined_call_operand.hbm [shape: f32[3,1,128], index: 5, kind: output, shape index: {}]  }
   0x1   :  { %1427 = sst [smem:[#allocation28_spill]] %s1407_s1  ;;  %s721_s20 = scalar_lea.hbm %s1406_s0, 16 }
   0x2   :  { %1428 = sst [smem:[#allocation29_spill]] %s1408_s2  ;;  %p722_p0 = scmp.ne.s32.totalorder %s1406_s0, %s721_s20 }
   0x3   :  { %1429 = sst [smem:[#allocation30_spill]] %s1409_s3  ;;  %p725_p1 = scmp.lt.u32.totalorder %s721_s20, %s1406_s0 }
   0x5   :  { %p727_p2 = pnand %p725_p1, %p722_p0 }
   0x7   :  { %730 = shalt.err (!%p727_p2)  }
   0x8   :  { %s958_s25 = smov [#allocation3]  }
   0x9   :  { %11 = dma.hbm_to_smem %s1406_s0, 16, %s958_s25, [#allocation2] }
   0xa   :  { %900 = dma.done.wait [#allocation2], 16 }
   0xb   :  { %901 = vsyncadd [#allocation2], 4294967280 }
   0xc   :  { %13 = sfence }
   0xd   :  { %14 = vsyncpa [#allocation7], 0 }
   0xe   :  { %15 = vsyncpa [#allocation5], 0 }
   0xf   :  { %17 = vsyncpa [#allocation5 + $0x1], 0 }
  0x10   :  { %18 = vsyncpa [#allocation10], 0 }
  0x11   :  { %20 = vsyncpa [#allocation10 + $0x1], 0 }
  0x12   :  { %21 = vsyncpa [#allocation6], 0 }
  0x13   :  { %23 = vsyncpa [#allocation6 + $0x1], 0  ;;  %s1009_s28 = smov 0   ;;  %s1011_s29 = smov 0  }
  0x14   :  { %s1013_s30 = smov 0   ;;  %s1015_s6 = smov 0  }
  0x15   :  { %s1017_s7 = smov 0   ;;  %s1019_s0 = smov 0  }
  0x16   :  { %s1021_s8 = smov 0   ;;  %s1023_s9 = smov 0  }
  0x17   :  { %s1025_s10 = smov 0  }
  0x18 LB: > { %1430 = sst [smem:[#allocation21_spill]] %s932_s30  ;;  %s41_s11 = sadd.s32 1, %s952_s9  ;;  %s956_s10 = sphi %s1025_s10, %s29_s10   ;;  %s952_s9 = sphi %s1023_s9, %s1477_s9   ;;  %s948_s8 = sphi %s1021_s8, %s1476_s8   ;;  %s944_s0 = sphi %s1019_s0, %s1470_s0   ;;  %s940_s7 = sphi %s1017_s7, %s1475_s7   ;;  %s936_s6 = sphi %s1015_s6, %s1474_s6   ;;  %s932_s30 = sphi %s1013_s30, %s1468_s30   ;;  %s928_s29 = sphi %s1011_s29, %s1473_s29   ;;  %s924_s28 = sphi %s1009_s28, %s1472_s28  }
  0x19   : > { %1431 = sst [smem:[#allocation22_spill]] %s936_s6  ;;  %p1413_p3 = scmp.eq.s32.totalorder %s956_s10, 0 }
  0x1a   : > { %1432 = sst [smem:[#allocation23_spill]] %s944_s0  ;;  %p43_p4 = scmp.ge.s32.totalorder %s41_s11, 3 }
  0x1b   : > { %s94_s12 = sld [smem:[#allocation3 + %s952_s9]]  ;;  %s101_s13 = sadd.s32 1, %s932_s30 }
  0x1c   : > { %p108_p5 = scmp.ne.s32.totalorder %s932_s30, %s928_s29  ;;  %s1479_s11 = smov (%p43_p4, %s41_s11), 0 }
  0x1d   : > { %1433 = sst [smem:[#allocation24_spill]] %s1479_s11  ;;  %p1412_p7 = scmp.lt.s32.totalorder %s956_s10, 3 }
  0x1e   : > { %p1064_p6 = por %p108_p5, %p1413_p3  ;;  %s95_s15 = sld [smem:[#allocation3 + %s1479_s11]] }
  0x1f   : > { %s225_s16 = sand.u32 1, %s956_s10   ;;  %s227_s17 = sand.u32 1, %s932_s30  }
  0x20   : > { %s598_s18 = smul.u32 24, %s227_s17  ;;  %p1078_p8 = pnand %p1412_p7, %p1064_p6 }
  0x21   : > { %s605_s19 = scalar_select %p1064_p6, [#allocation3], [#allocation13] }
  0x22   : > { %s229_s22 = scalar_lea.vmem [#allocation9], %s598_s18  ;;  %s1095_s27 = sadd.s32 4294967295, %s956_s10  }
  0x23   : > { %s238_s23 = sshll.u32 %s229_s22, 4  ;;  %s1481_s19 = smov (!%p1412_p7, %s605_s19), [#allocation14]  ;;  %s1082_s23 = int_to_ptr.vmem [resolvable:$true] %s238_s23 }
  0x24   : > { %s96_s21 = ssub.s32 %s94_s12, %s95_s15  ;;  %s578_s12 = sadd.s32 4294967294, %s956_s10  }
  0x25   : > { %p99_p9 = scmp.eq.s32.totalorder %s96_s21, 0  ;;  %p1415_p10 = scmp.ne.s32.totalorder %s940_s7, %s936_s6 }
  0x26   : > { %s606_s24 = scalar_select %p1064_p6, %s952_s9, 0 }
  0x27   : > { %s1088_s25 = scalar_select %p99_p9, %s932_s30, %s101_s13  }
  0x28   : > { %s1483_s24 = smov (!%p1412_p7, %s606_s24), 0  ;;  %p1414_p11 = scmp.eq.s32.totalorder %s1095_s27, 0 }
  0x29   : > { %1436 = sst [smem:[#allocation25_spill]] %s1088_s25  ;;  %p114_p12 = scmp.ne.s32.totalorder %s928_s29, %s924_s28 }
  0x2a   : > { %s230_s26 = sld [smem:[%s1481_s19 + %s1483_s24]]  ;;  %p1108_p13 = por %p1414_p11, %p1415_p10 }
  0x2b   : > { %s1438_s3 = sld [smem:[#allocation30_spill]]  ;;  %p1120_p1 = por %p114_p12, %p1414_p11 }
  0x2c   : > { %s1437_s13 = scalar_select %p1108_p13, 1, 0 }
  0x2d   : > { %s1439_s19 = scalar_select %p1120_p1, 1, 0 }
  0x2e   : > { %s1124_s28 = scalar_lea.sflag [#allocation10], %s225_s16  ;;  %p733_p4 = pneg %p1078_p8 }
  0x30   : > { %s599_s14 = smul.u32 384, %s230_s26 }
  0x31   : > { %s736_s26 = scalar_lea.hbm %s1438_s3, 1152 }
  0x32   : > { %s1116_s18 = scalar_lea.hbm %s1438_s3, %s599_s14 }
  0x33   : > { %s731_s21 = scalar_lea.hbm %s1116_s18, 384  ;;  %p737_p9 = scmp.lt.u32.totalorder %s1116_s18, %s1438_s3 }
  0x34   : > { %p732_p2 = scmp.ne.s32.totalorder %s1116_s18, %s731_s21  ;;  %p738_p12 = scmp.lt.u32.totalorder %s736_s26, %s731_s21 }
  0x35   : > { %p740_p0 = scmp.lt.u32.totalorder %s731_s21, %s1116_s18 }
  0x36   : > { %p734_p5 = pnand %p733_p4, %p732_p2  ;;  %p739_p7 = por %p738_p12, %p737_p9 }
  0x38   : > { %p735_p6 = pneg %p734_p5  ;;  %p741_p3 = por %p740_p0, %p739_p7 }
  0x3a   : > { %p742_p11 = pnand %p741_p3, %p735_p6 }
  0x3c   : > { %745 = shalt.err (!%p742_p11)
}
  0x3d   : > { %s746_s16 = scalar_lea.vmem %s1082_s23, 384  ;;  %s959_s17 = smov [#allocation9]  }
  0x3e   : > { %p747_p2 = scmp.ne.s32.totalorder %s1082_s23, %s746_s16  ;;  %s751_s22 = sshll.u32 %s959_s17, 4  ;;  %s752_s22 = int_to_ptr.vmem [resolvable:$false] %s751_s22 }
  0x3f   : > { %s753_s24 = scalar_lea.vmem %s752_s22, 768  ;;  %p754_p1 = scmp.lt.s32.totalorder %s1082_s23, %s752_s22 }
  0x40   : > { %p749_p5 = pnand %p747_p2, %p733_p4  ;;  %p755_p9 = scmp.lt.s32.totalorder %s753_s24, %s746_s16 }
  0x42   : > { %p750_p10 = pneg %p749_p5  ;;  %p756_p12 = por %p755_p9, %p754_p1 }
  0x44   : > { %p757_p7 = pnand %p756_p12, %p750_p10 }
  0x46   : > { %760 = shalt.err (!%p757_p7)
}
  0x47   : > { %s1417_s21 = smov 128   ;;  %s1418_s26 = smov 8  }
  0x48   : > { %628 = dma.hbm_to_vmem [thread:$0]  (!%p1078_p8), %s1116_s18, 384, %s1082_s23, %s1124_s28, %s1417_s21, %s1417_s21, %s1418_s26  }
  0x49   : > { %p172_p3 = scmp.eq.s32.totalorder %s578_s12, 2  ;;  %p579_p10 = scmp.ge.s32.totalorder %s956_s10, 1 }
  0x4a   : > { %p179_p11 = scmp.lt.s32.totalorder %s956_s10, 4  ;;  %p1440_p0 = scmp.ne.s32.totalorder %s940_s7, %s936_s6 }
  0x4b   : > { %s1443_s1 = sld [smem:[#allocation28_spill]]  ;;  %s66_s20 = ssub.s32 %s952_s9, %s1479_s11 }
  0x4c   : > { %p1162_p1 = por %p172_p3, %p1440_p0  ;;  %p1169_p4 = pnand %p579_p10, %p179_p11 }
  0x4d   : > { %s71_s23 = sadd.s32 1, %s944_s0  ;;  %p1445_p6 = scmp.eq.s32.totalorder %s1095_s27, 0 }
  0x4e   : > { %s1441_s14 = scalar_select %p1162_p1, 1, 0 }
  0x4f   : > { %s1444_s22 = scalar_select %p1169_p4, 1, 0 }
  0x50   : > { %1442 = sst [smem:[#allocation26_spill]] %s1441_s14  ;;  %p616_p8 = pneg %p1169_p4 }
  0x51   : > { %s192_s17 = sshll.u32 %s1443_s1, 4  ;;  %p1184_p5 = scmp.eq.s32.totalorder %s66_s20, 0  ;;  %s193_s17 = int_to_ptr.vmem [resolvable:$true] %s192_s17 }
  0x52   : > { %p1180_p2 = pnand %p616_p8, %p1445_p6  ;;  %p78_p9 = scmp.ne.s32.totalorder %s944_s0, %s940_s7 }
  0x53   : > { %s1191_s24 = sand.u32 1, %s944_s0   ;;  %s761_s15 = scalar_lea.vmem %s193_s17, 16 }
  0x54   : > { %p762_p12 = scmp.ne.s32.totalorder %s193_s17, %s761_s15  ;;  %p763_p7 = pneg %p1180_p2 }
  0x55   : > { %p769_p11 = scmp.lt.s32.totalorder %s193_s17, %s193_s17  ;;  %p770_p0 = scmp.lt.s32.totalorder %s761_s15, %s761_s15 }
  0x56   : > { %p764_p3 = pnand %p763_p7, %p762_p12 }
  0x57   : > { %p771_p8 = por %p770_p0, %p769_p11 }
  0x58   : > { %p765_p10 = pneg %p764_p3 }
  0x5a   : > { %p772_p6 = pnand %p771_p8, %p765_p10 }
  0x5c   : > { %775 = shalt.err (!%p772_p6)
}
  0x5d   : > { %s962_s16 = smov [#allocation4]   ;;  %p1449_p12 = scmp.eq.s32.totalorder %s956_s10, 0 }
  0x5e   : > { %619 = dma.vmem_to_smem (!%p1180_p2), %s193_s17, 16, %s962_s16, [#allocation7]  }
  0x5f   : > { %s1200_s20 = scalar_select %p1184_p5, %s944_s0, %s71_s23  }
  0x60   : > { %p80_p7 = por %p1449_p12, %p78_p9  ;;  %p1450_p3 = scmp.eq.s32.totalorder %s1095_s27, 2 }
  0x61   : > { %1448 = sst [smem:[#allocation27_spill]] %s1200_s20  ;;  %s596_s15 = smul.u32 24, %s1191_s24 }
  0x62   : > { %p1212_p10 = por %p1450_p3, %p78_p9  ;;  %s597_s26 = smul.u32 384, %s952_s9 }
  0x63   : > { %p1452_p11 = scmp.lt.s32.totalorder %s956_s10, 3  ;;  %s1454_s2 = sld [smem:[#allocation29_spill]] }
  0x64   : > { %s1451_s12 = scalar_select %p1212_p10, 1, 0 }
  0x65   : > { %p1221_p0 = pnand %p1452_p11, %p80_p7  ;;  %s207_s16 = scalar_lea.vmem [#allocation8], %s596_s15 }
  0x66   : > { %s215_s3 = sshll.u32 %s207_s16, 4  ;;  %s204_s21 = scalar_lea.sflag [#allocation5], %s1191_s24  ;;  %s1230_s3 = int_to_ptr.vmem [resolvable:$true] %s215_s3 }
  0x67   : > { %p778_p5 = pneg %p1221_p0 }
  0x69   : > { %s1228_s18 = scalar_lea.hbm %s1454_s2, %s597_s26  ;;  %s781_s23 = scalar_lea.hbm %s1454_s2, 1152 }
  0x6a   : > { %s776_s11 = scalar_lea.hbm %s1228_s18, 384  ;;  %p782_p6 = scmp.lt.u32.totalorder %s1228_s18, %s1454_s2 }
  0x6b   : > { %p777_p2 = scmp.ne.s32.totalorder %s1228_s18, %s776_s11  ;;  %p783_p12 = scmp.lt.u32.totalorder %s781_s23, %s776_s11 }
  0x6c   : > { %p785_p3 = scmp.lt.u32.totalorder %s776_s11, %s1228_s18 }
  0x6d   : > { %p779_p9 = pnand %p778_p5, %p777_p2  ;;  %p784_p7 = por %p783_p12, %p782_p6 }
  0x6f   : > { %p780_p8 = pneg %p779_p9  ;;  %p786_p11 = por %p785_p3, %p784_p7 }
  0x71   : > { %p787_p1 = pnand %p786_p11, %p780_p8 }
  0x73   : > { %790 = shalt.err (!%p787_p1)
}
  0x74   : > { %s791_s15 = scalar_lea.vmem %s1230_s3, 384  ;;  %s963_s16 = smov [#allocation8]  }
  0x75   : > { %p792_p2 = scmp.ne.s32.totalorder %s1230_s3, %s791_s15  ;;  %s796_s17 = sshll.u32 %s963_s16, 4  ;;  %s797_s17 = int_to_ptr.vmem [resolvable:$false] %s796_s17 }
  0x76   : > { %s798_s0 = scalar_lea.vmem %s797_s17, 768  ;;  %p799_p13 = scmp.lt.s32.totalorder %s1230_s3, %s797_s17 }
  0x77   : > { %p794_p9 = pnand %p792_p2, %p778_p5  ;;  %p800_p6 = scmp.lt.s32.totalorder %s798_s0, %s791_s15 }
  0x79   : > { %p795_p10 = pneg %p794_p9  ;;  %p801_p12 = por %p800_p6, %p799_p13 }
  0x7b   : > { %p802_p7 = pnand %p801_p12, %p795_p10 }
  0x7d   : > { %805 = shalt.err (!%p802_p7)
}
  0x7e   : > { %s1455_s11 = smov 8   ;;  %s1456_s20 = smov 128  }
  0x7f   : > { %623 = dma.hbm_to_vmem [thread:$0]  (!%p1221_p0), %s1228_s18, 384, %s1230_s3, %s204_s21, %s1456_s20, %s1456_s20, %s1455_s11  }
  0x80   : > { %s585_s26 = sshll.u32 %s952_s9, 7  ;;  %s1457_s23 = sshll.u32 %s1191_s24, 3 }
  0x81   : > { %s252_s16 = scalar_lea.vmem [#allocation11], %s1457_s23  ;;  %s258_s2 = scalar_lea.hbm %s1410_s4, %s585_s26 }
  0x82   : > { %s260_s15 = sshll.u32 %s252_s16, 4  ;;  %s806_s25 = scalar_lea.hbm %s258_s2, 128  ;;  %s261_s15 = int_to_ptr.vmem [resolvable:$true] %s260_s15 }
  0x83   : > { %p807_p13 = scmp.ne.s32.totalorder %s258_s2, %s806_s25  ;;  %s811_s6 = scalar_lea.hbm %s1410_s4, 384 }
  0x84   : > { %p812_p8 = scmp.lt.u32.totalorder %s258_s2, %s1410_s4  ;;  %p813_p3 = scmp.lt.u32.totalorder %s811_s6, %s806_s25 }
  0x85   : > { %p809_p1 = pnand %p807_p13, %p778_p5  ;;  %p815_p2 = scmp.lt.u32.totalorder %s806_s25, %s258_s2 }
  0x86   : > { %p814_p11 = por %p813_p3, %p812_p8 }
  0x87   : > { %p810_p10 = pneg %p809_p1 }
  0x88   : > { %p816_p9 = por %p815_p2, %p814_p11 }
  0x8a   : > { %p817_p6 = pnand %p816_p9, %p810_p10 }
  0x8c   : > { %820 = shalt.err (!%p817_p6)
}
  0x8d   : > { %s821_s24 = scalar_lea.vmem %s261_s15, 128  ;;  %s964_s18 = smov [#allocation11]  }
  0x8e   : > { %p822_p12 = scmp.ne.s32.totalorder %s261_s15, %s821_s24  ;;  %s826_s30 = sshll.u32 %s964_s18, 4  ;;  %s827_s30 = int_to_ptr.vmem [resolvable:$false] %s826_s30 }
  0x8f   : > { %s828_s14 = scalar_lea.vmem %s827_s30, 256  ;;  %p829_p1 = scmp.lt.s32.totalorder %s261_s15, %s827_s30 }
  0x90   : > { %p824_p7 = pnand %p822_p12, %p778_p5  ;;  %p830_p4 = scmp.lt.s32.totalorder %s828_s14, %s821_s24 }
  0x92   : > { %p825_p13 = pneg %p824_p7  ;;  %p831_p3 = por %p830_p4, %p829_p1 }
  0x94   : > { %p832_p8 = pnand %p831_p3, %p825_p13 }
  0x96   : > { %835 = shalt.err (!%p832_p8)
}
  0x97   : > { %631 = dma.hbm_to_vmem [thread:$0]  (!%p1221_p0), %s258_s2, 128, %s261_s15, %s1124_s28  }
  0x98   : > { %p1458_p10 = scmp.ne.s32.totalorder %s1444_s22, 0 }
  0x99   : > { %p1459_p11 = scmp.eq.s32.totalorder (!%p1458_p10), %s1095_s27, 0 }
  0x9a   : > { %269 = sbr.rel (%p1458_p10) target bundleno = 252 (0xfc), region = 36 }
  0xa1   : > { %903 = dma.done.wait (%p1459_p11), [#allocation7], 16   ;;  %p1460_p5 = pmov %p1459_p11 }
  0xa2   : > { %s1291_s6 = sand.u32 1, %s940_s7   ;;  %p1461_p4 = scmp.ne.s32.totalorder %s1437_s13, 0 }
  0xa3   : > { %905 = vsyncadd (%p1460_p5), [#allocation7], 4294967280  ;;  %s600_s25 = smul.u32 24, %s1291_s6  ;;  %s276_s11 = scalar_lea.sflag [#allocation5], %s1291_s6 }
  0xa5   : > { %s1295_s1 = scalar_lea.vmem [#allocation8], %s600_s25 }
  0xa6   : > { %907 = dma.done.wait (%p1461_p4), %s276_s11, 384  }
  0xa7   : > { %909 = vsyncadd (%p1461_p4), %s276_s11, 4294966912  ;;  %s284_s2 = sand.u32 1, %s1095_s27   ;;  %s286_s28 = sand.u32 1, %s928_s29  }
  0xa8   : > { %s601_s22 = smul.u32 24, %s286_s28  ;;  %s285_s20 = scalar_lea.sflag [#allocation10], %s284_s2 }
  0xa9   : > { %p1462_p0 = scmp.ne.s32.totalorder %s1439_s19, 0 }
  0xaa   : > { %s1303_s26 = scalar_lea.vmem [#allocation9], %s601_s22 }
  0xab   : > { %911 = dma.done.wait (%p1462_p0), %s285_s20, 384  }
  0xac   : > { %913 = vsyncadd (%p1462_p0), %s285_s20, 4294966912  ;;  %s588_s23 = sshll.u32 %s1291_s6, 3 }
  0xad   : > { %s1310_s16 = scalar_lea.vmem [#allocation11], %s588_s23 }
  0xae   : > { %915 = dma.done.wait (%p1461_p4), %s285_s20, 128  }
  0xaf   : > { %917 = vsyncadd (%p1461_p4), %s285_s20, 4294967168 }
  0xb0   : > { %302 = sfence }
  0xb1   : > { %s1317_s27 = smul.u32 12, %s948_s8  ;;  %s1320_s19 = scalar_lea.vmem [#allocation12], %s1291_s6  ;;  %v965_v0 = vmov 0.0   ;;  %v357_v1 = vld [vmem:[%s1295_s1] sm:$0xff]  ;;  %v589_v2 = vld [vmem:[%s1295_s1 + $0x8] sm:$0xff]  ;;  %v590_v3 = vld [vmem:[%s1295_s1 + $0x10] sm:$0xff] }
  0xb2   : > { %426 = vst [vmem:[%s1320_s19] sm:$0x1] %v965_v0  ;;  %v392_v27 = vld [vmem:[%s1303_s26] sm:$0xff]  ;;  %v591_v31 = vld [vmem:[%s1303_s26 + $0x8] sm:$0xff]  ;;  %v592_v37 = vld [vmem:[%s1303_s26 + $0x10] sm:$0xff]  ;;  %s593_s26 = sshll.u32 %s948_s8, 4  ;;  %p1463_p9 = scmp.ne.s32.totalorder %s1451_s12, 0 }
  0xb3   : > { %s334_s13 = sld [smem:[#allocation4 + %s1317_s27]]  ;;  %s335_s15 = sadd.s32 1, %s1317_s27  ;;  %v412_v43 = vld [vmem:[%s1310_s16] sm:$0xff] }
  0xb4   : > { %s336_s17 = sld [smem:[#allocation4 + %s335_s15]]  ;;  %s337_s0 = sadd.s32 2, %s1317_s27  ;;  %717 = vlog2.f32 %v412_v43 }
  0xb5   : > { %s338_s3 = sld [smem:[#allocation4 + %s337_s0]]  ;;  %s339_s21 = sadd.s32 3, %s1317_s27 }
  0xb6   : > { %s340_s24 = sld [smem:[#allocation4 + %s339_s21]]  ;;  %s341_s18 = sadd.s32 4, %s1317_s27 }
  0xb7   : > { %s342_s30 = sld [smem:[#allocation4 + %s341_s18]]  ;;  %s343_s14 = sadd.s32 5, %s1317_s27 }
  0xb8   : > { %s344_s25 = sld [smem:[#allocation4 + %s343_s14]]  ;;  %s345_s11 = sadd.s32 6, %s1317_s27 }
  0xb9   : > { %s346_s2 = sld [smem:[#allocation4 + %s345_s11]]  ;;  %s347_s28 = sadd.s32 7, %s1317_s27  ;;  %v362_v4 = vstv %s334_s13  ;;  %v427_v59 = vld [vmem:[%s1320_s19] sm:$0x1] }
  0xba   : > { %s348_s22 = sld [smem:[#allocation4 + %s347_s28]]  ;;  %s349_s20 = sadd.s32 8, %s1317_s27  ;;  %v363_v5 = vmul.f32 %v362_v4, %v357_v1  ;;  %v364_v6 = vstv %s336_s17 }
  0xbb   : > { %s350_s23 = sld [smem:[#allocation4 + %s349_s20]]  ;;  %s351_s15 = sadd.s32 9, %s1317_s27  ;;  %v365_v7 = vmul.f32 %v589_v2, %v364_v6  ;;  %v367_v8 = vstv %s338_s3 }
  0xbc   : > { %s352_s0 = sld [smem:[#allocation4 + %s351_s15]]  ;;  %s353_s21 = sadd.s32 10, %s1317_s27  ;;  %v368_v9 = vmul.f32 %v590_v3, %v367_v8  ;;  %v372_v10 = vstv %s340_s24 }
  0xbd   : > { %s354_s18 = sld [smem:[#allocation4 + %s353_s21]]  ;;  %s355_s14 = sadd.s32 11, %s1317_s27  ;;  %v366_v11 = vadd.f32 %v365_v7, %v363_v5  ;;  %v373_v12 = vmul.f32 %v372_v10, %v357_v1  ;;  %v374_v13 = vstv %s342_s30 }
  0xbe   : > { %s356_s1 = sld [smem:[#allocation4 + %s355_s14]]  ;;  %v375_v14 = vmul.f32 %v589_v2, %v374_v13  ;;  %v377_v15 = vstv %s344_s25  ;;  %v718_v46 = vpop.eup %717  ;;  %s443_s16 = sshll.u32 %s1320_s19, 4  ;;  %s1350_s16 = int_to_ptr.vmem [resolvable:$true] %s443_s16 }
  0xbf   : > { %v369_v16 = vadd.f32 %v368_v9, %v366_v11  ;;  %v378_v17 = vmul.f32 %v590_v3, %v377_v15  ;;  %v382_v18 = vstv %s346_s2  ;;  %v414_v50 = vmul.f32 0.6931472, %v718_v46  ;;  %s1348_s17 = scalar_lea.hbm %s1411_s5, %s593_s26  ;;  %s431_s3 = scalar_lea.sflag [#allocation6], %s1291_s6 }
  0xc0   : > { %v376_v19 = vadd.f32 %v375_v14, %v373_v12  ;;  %v383_v20 = vmul.f32 %v382_v18, %v357_v1  ;;  %v384_v21 = vstv %s348_s22  ;;  %s836_s24 = scalar_lea.vmem %s1350_s16, 16  ;;  %s966_s8 = smov [#allocation12]  }
  0xc1   : > { %v385_v22 = vmul.f32 %v589_v2, %v384_v21  ;;  %v387_v23 = vstv %s350_s23  ;;  %p837_p2 = scmp.ne.s32.totalorder %s1350_s16, %s836_s24  ;;  %s840_s30 = sshll.u32 %s966_s8, 4  ;;  %s841_s30 = int_to_ptr.vmem [resolvable:$false] %s840_s30 }
  0xc2   : > { %v370_v24 = vstv %s352_s0  ;;  %v379_v25 = vadd.f32 %v378_v17, %v376_v19  ;;  %v388_v26 = vmul.f32 %v590_v3, %v387_v23  ;;  %s842_s25 = scalar_lea.vmem %s841_s30, 32  ;;  %p843_p7 = scmp.lt.s32.totalorder %s1350_s16, %s841_s30 }
  0xc3   : > { %v371_v28 = vadd.f32 %v370_v24, %v369_v16  ;;  %v380_v29 = vstv %s354_s18  ;;  %v386_v30 = vadd.f32 %v385_v22, %v383_v20  ;;  %p838_p6 = pnand %p837_p2, %p1463_p9  ;;  %p844_p13 = scmp.lt.s32.totalorder %s842_s25, %s836_s24 }
  0xc4   : > { %v381_v32 = vadd.f32 %v380_v29, %v379_v25  ;;  %v390_v33 = vstv %s356_s1 }
  0xc5   : > { %v389_v34 = vadd.f32 %v388_v26, %v386_v30  ;;  %v393_v35 = vsub.f32 %v371_v28, %v392_v27  ;;  %p839_p12 = pneg %p838_p6  ;;  %p845_p1 = por %p844_p13, %p843_p7 }
  0xc6   : > { %v396_v36 = vsub.f32 %v381_v32, %v591_v31 }
  0xc7   : > { %v391_v38 = vadd.f32 %v390_v33, %v389_v34  ;;  %v400_v39 = vmul.f32 %v393_v35, %v393_v35  ;;  %p846_p3 = pnand %p845_p1, %p839_p12 }
  0xc8   : > { %v401_v40 = vmul.f32 %v396_v36, %v396_v36 }
  0xc9   : > { %v399_v41 = vsub.f32 %v391_v38, %v592_v37 }
  0xca   : > { %v402_v42 = vadd.f32 %v401_v40, %v400_v39 }
  0xcb   : > { %v403_v44 = vmul.f32 %v399_v41, %v399_v41 }
  0xcd   : > { %v404_v45 = vadd.f32 %v403_v44, %v402_v42 }
  0xcf   : > { %719 = vrsqrt.f32 %v404_v45  ;;  %vm407_vm0 = vcmp.eq.f32.partialorder %v404_v45, inf  ;;  %v410_v48 = vand.u32 2147483648, %v404_v45  ;;  %vm409_vm1 = vcmp.eq.f32.partialorder %v404_v45, 0.0 }
  0xd9   : > { %v720_v47 = vpop.eup %719 }
  0xda   : > { %v406_v49 = vmul.f32 %v720_v47, %v404_v45 }
  0xdc   : > { %v408_v51 = vsel %vm407_vm0, %v404_v45, %v406_v49 }
  0xdd   : > { %v411_v52 = vsel %vm409_vm1, %v410_v48, %v408_v51 }
  0xde   : > { %v415_v53 = vmul.f32 %v414_v50, %v411_v52 }
  0xe0   : > { %v416_v54 = vrot.slane %v415_v53, 4 }
  0xe2   : > { %v417_v55 = vadd.f32 %v416_v54, %v415_v53 }
  0xe4   : > { %v418_v56 = vrot.slane %v417_v55, 2 }
  0xe6   : > { %v419_v57 = vadd.f32 %v418_v56, %v417_v55 }
  0xe8   : > { %v420_v58 = vrot.slane %v419_v57, 1 }
  0xea   : > { %v421_v60 = vadd.f32 %v420_v58, %v419_v57 }
  0xec   : > { %v428_v61 = vadd.f32 %v427_v59, %v421_v60 }
  0xee   : > { %429 = vst [vmem:[%s1320_s19] sm:$0x1] %v428_v61 }
  0xef   : > { %849 = shalt.err (!%p846_p3)
}
  0xf0   : > { %s850_s6 = scalar_lea.hbm %s1348_s17, 16  ;;  %s854_s2 = scalar_lea.hbm %s1411_s5, 48 }
  0xf1   : > { %p851_p8 = scmp.ne.s32.totalorder %s1348_s17, %s850_s6  ;;  %p855_p5 = scmp.lt.u32.totalorder %s1348_s17, %s1411_s5 }
  0xf2   : > { %p856_p4 = scmp.lt.u32.totalorder %s854_s2, %s850_s6  ;;  %p858_p2 = scmp.lt.u32.totalorder %s850_s6, %s1348_s17 }
  0xf3   : > { %p852_p10 = pnand %p851_p8, %p1463_p9 }
  0xf4   : > { %p857_p0 = por %p856_p4, %p855_p5 }
  0xf5   : > { %p853_p11 = pneg %p852_p10 }
  0xf6   : > { %p859_p6 = por %p858_p2, %p857_p0 }
  0xf8   : > { %p860_p12 = pnand %p859_p6, %p853_p11 }
  0xfa   : > { %863 = shalt.err (!%p860_p12)
}
  0xfb   : > { %614 = dma.vmem_to_hbm [thread:$0]  (%p1463_p9), %s1350_s16, 16, %s1348_s17, %s431_s3  }
  0xfc PF: > { %s1464_s20 = sld [smem:[#allocation22_spill]]  ;;  %s1465_s23 = sld [smem:[#allocation26_spill]] }
  0xfd   : > { %p639_p7 = scmp.ge.s32.totalorder %s956_s10, 2 }
 0x102   : > { %s455_s15 = sand.u32 1, %s1464_s20   ;;  %p1466_p13 = scmp.ne.s32.totalorder %s1465_s23, 0 }
 0x103   : > { %s456_s0 = scalar_lea.sflag [#allocation6], %s455_s15 }
 0x104   : > { %p633_p1 = pnand %p639_p7, %p1466_p13 }
 0x106   : > { %919 = dma.done.wait (!%p633_p1), %s456_s0, 16  }
 0x107   : > { %921 = vsyncadd (!%p633_p1), %s456_s0, 4294967280  ;;  %s29_s10 = sadd.s32 1, %s956_s10   ;;  %s1467_s21 = sld [smem:[#allocation21_spill]] }
 0x108   : > { %p26_p3 = scmp.ge.s32.totalorder %s29_s10, 5   ;;  %s1468_s30 = sld [smem:[#allocation25_spill]] }
 0x109   : > { %s1469_s12 = sld [smem:[#allocation23_spill]]  ;;  %s1470_s0 = sld [smem:[#allocation27_spill]] }
 0x10a   : > { %s1471_s18 = sld [smem:[#allocation24_spill]]  ;;  %s1472_s28 = smov %s928_s29 }
 0x10b   : > { %s1474_s6 = smov %s940_s7  ;;  %s1476_s8 = smov %s952_s9 }
 0x10c   :  { %28 = sbr.rel (!%p26_p3) target bundleno = 24 (0x18), region = 118 }
 0x10d   : > { %s1473_s29 = smov %s1467_s21 }
 0x10f   : > { %s1475_s7 = smov %s1469_s12 }
 0x110   : > { %s1477_s9 = smov %s1471_s18 }
 0x113   :  { %460 = vsyncpa [#allocation5], 1 }
 0x114   :  { %462 = vsyncpa [#allocation5 + $0x1], 1 }
 0x115   :  { %463 = vsyncpa [#allocation10], 1 }
 0x116   :  { %465 = vsyncpa [#allocation10 + $0x1], 1 }
 0x117   :  { %466 = vsyncpa [#allocation6], 1 }
 0x118   :  { %468 = vsyncpa [#allocation6 + $0x1], 1 }
 0x119   :  { %469 = vsyncpa [#allocation7], 1 }
 0x11a   :  { %471 = vsyncpa [#allocation7 + $0x1], 1 }

</bundles_post_ra>
